<compile_context>
chip_gen: v5e
topology: v5e:2x2
jax: 0.10.0
libtpu: 0.0.40
codegen_flags: <defaults>
</compile_context>

<pallas_src>
import jax
import jax.numpy as jnp
from jax import lax
from jax.experimental import pallas as pl
from jax.experimental.pallas import tpu as pltpu


def _cq_attention_kernel(c_ref, q_ref, cmask_ref, qmask_ref,
                         w4c_ref, w4q_ref, w4mlu_ref, bias_ref, o_ref):
    # Per-batch tiles (leading batch dim squeezed away by BlockSpec `None`).
    c = c_ref[...].astype(jnp.float32)          # (Lc, D)
    q = q_ref[...].astype(jnp.float32)          # (Lq, D)
    cmask = cmask_ref[...].astype(jnp.float32)  # (Lc, 1)
    qmask = qmask_ref[...].astype(jnp.float32)  # (1, Lq)
    w4c = w4c_ref[...].astype(jnp.float32)      # (D, 1)
    w4q = w4q_ref[...].astype(jnp.float32)      # (1, D)   (pre-transposed)
    w4mlu = w4mlu_ref[...].astype(jnp.float32)  # (1, D)
    bias = bias_ref[...].astype(jnp.float32)    # (1, 1)

    # TODO(synk): F.dropout on C/Q in trilinear_for_attention is stochastic;
    # treated as identity (inference / eval behaviour) here.

    # --- trilinear attention logits S: (Lc, Lq) ---
    c_proj = jnp.dot(c, w4c, preferred_element_type=jnp.float32)        # (Lc, 1)
    q_proj = lax.dot_general(w4q, q, (((1,), (1,)), ((), ())),
                             preferred_element_type=jnp.float32)        # (1, Lq)
    s = lax.dot_general(c * w4mlu, q, (((1,), (1,)), ((), ())),
                        preferred_element_type=jnp.float32)             # (Lc, Lq)
    s = s + c_proj + q_proj + bias

    neg = jnp.float32(-1e30)
    s_q = s + neg * (1.0 - qmask)   # mask over the query axis (columns)
    s_c = s + neg * (1.0 - cmask)   # mask over the context axis (rows)

    # S1 = softmax over Lq (last dim)
    e_q = jnp.exp(s_q - jnp.max(s_q, axis=-1, keepdims=True))
    s1 = e_q / jnp.sum(e_q, axis=-1, keepdims=True)                     # (Lc, Lq)

    # S2 = softmax over Lc (first dim)
    e_c = jnp.exp(s_c - jnp.max(s_c, axis=0, keepdims=True))
    s2 = e_c / jnp.sum(e_c, axis=0, keepdims=True)                      # (Lc, Lq)

    # A = S1 @ Q ; B = (S1 @ S2^T) @ C
    a = jnp.dot(s1, q, preferred_element_type=jnp.float32)              # (Lc, D)
    s1s2t = lax.dot_general(s1, s2, (((1,), (1,)), ((), ())),
                            preferred_element_type=jnp.float32)         # (Lc, Lc)
    b = jnp.dot(s1s2t, c, preferred_element_type=jnp.float32)           # (Lc, D)

    # Lane-dense (Lc, 4*D) output slab, stored in one go.
    out = jnp.concatenate([c, a, c * a, c * b], axis=-1)                # (Lc, 4D)
    o_ref[...] = out.astype(o_ref.dtype)


def cq_attention(C, Q, Cmask, Qmask, w4C, w4Q, w4mlu, bias):
    """C: (B, Lc, D), Q: (B, Lq, D), Cmask: (B, Lc), Qmask: (B, Lq).

    Returns (B, 4*D, Lc), matching the PyTorch module's forward output.
    """
    B, Lc, D = C.shape
    Lq = Q.shape[1]

    cmask3 = Cmask.reshape(B, Lc, 1).astype(jnp.float32)
    qmask3 = Qmask.reshape(B, 1, Lq).astype(jnp.float32)
    w4q_row = w4Q.reshape(1, D)      # (D,1) -> (1,D), same data
    w4mlu_row = w4mlu.reshape(1, D)  # (1,1,D) -> (1,D)
    bias2 = bias.reshape(1, 1)

    out = pl.pallas_call(
        _cq_attention_kernel,
        out_shape=jax.ShapeDtypeStruct((B, Lc, 4 * D), C.dtype),
        grid_spec=pltpu.PrefetchScalarGridSpec(
            num_scalar_prefetch=0,
            grid=(B,),
            in_specs=[
                pl.BlockSpec((None, Lc, D), lambda b: (b, 0, 0)),    # C
                pl.BlockSpec((None, Lq, D), lambda b: (b, 0, 0)),    # Q
                pl.BlockSpec((None, Lc, 1), lambda b: (b, 0, 0)),    # Cmask
                pl.BlockSpec((None, 1, Lq), lambda b: (b, 0, 0)),    # Qmask
                pl.BlockSpec((D, 1), lambda b: (0, 0)),              # w4C
                pl.BlockSpec((1, D), lambda b: (0, 0)),              # w4Q (row)
                pl.BlockSpec((1, D), lambda b: (0, 0)),              # w4mlu (row)
                pl.BlockSpec((1, 1), lambda b: (0, 0)),              # bias
            ],
            out_specs=pl.BlockSpec((None, Lc, 4 * D), lambda b: (b, 0, 0)),
        ),
        compiler_params=pltpu.CompilerParams(
            dimension_semantics=("parallel",)),
    )(C, Q, cmask3, qmask3, w4C, w4q_row, w4mlu_row, bias2)

    # The module returns out.transpose(1, 2): (B, 4D, Lc).  Do it with XLA so
    # the kernel's store stays lane-dense.
    return jnp.swapaxes(out, 1, 2)


def _reference(C, Q, Cmask, Qmask, w4C, w4Q, w4mlu, bias):
    B, Lc, D = C.shape
    Lq = Q.shape[1]
    subres0 = jnp.matmul(C, w4C)                                    # (B, Lc, 1)
    subres1 = jnp.swapaxes(jnp.matmul(Q, w4Q), 1, 2)                # (B, 1, Lq)
    subres2 = jnp.matmul(C * w4mlu, jnp.swapaxes(Q, 1, 2))          # (B, Lc, Lq)
    S = subres0 + subres1 + subres2 + bias
    Cm = Cmask.reshape(B, Lc, 1).astype(jnp.float32)
    Qm = Qmask.reshape(B, 1, Lq).astype(jnp.float32)
    S1 = jax.nn.softmax(S + (-1e30) * (1.0 - Qm), axis=2)
    S2 = jax.nn.softmax(S + (-1e30) * (1.0 - Cm), axis=1)
    A = jnp.matmul(S1, Q)
    Bm = jnp.matmul(jnp.matmul(S1, jnp.swapaxes(S2, 1, 2)), C)
    out = jnp.concatenate([C, A, C * A, C * Bm], axis=2)
    return jnp.swapaxes(out, 1, 2)


if __name__ == "__main__":
    B, Lc, Lq, D = 2, 16, 8, 32

    key = jax.random.PRNGKey(0)
    kc, kq, k1, k2, k3 = jax.random.split(key, 5)

    C = jax.random.normal(kc, (B, Lc, D), dtype=jnp.float32)
    Q = jax.random.normal(kq, (B, Lq, D), dtype=jnp.float32)

    Cmask = jnp.ones((B, Lc), dtype=jnp.float32)
    Cmask = Cmask.at[1, Lc - 3:].set(0.0)
    Qmask = jnp.ones((B, Lq), dtype=jnp.float32)
    Qmask = Qmask.at[0, Lq - 2:].set(0.0)

    # Deterministic parameter init (shapes match the PyTorch module).
    w4C = jax.random.normal(k1, (D, 1), dtype=jnp.float32) * 0.1
    w4Q = jax.random.normal(k2, (D, 1), dtype=jnp.float32) * 0.1
    w4mlu = jax.random.normal(k3, (1, 1, D), dtype=jnp.float32) * 0.1
    bias = jnp.zeros((1,), dtype=jnp.float32)

    out = cq_attention(C, Q, Cmask, Qmask, w4C, w4Q, w4mlu, bias)
    out = jax.block_until_ready(out)

    ref = _reference(C, Q, Cmask, Qmask, w4C, w4Q, w4mlu, bias)
    assert out.shape == (B, 4 * D, Lc)
    assert jnp.allclose(out, ref, atol=1e-3, rtol=1e-3), \
        float(jnp.max(jnp.abs(out - ref)))

    print("KERNEL_OK")
</pallas_src>

<mosaic_0001>
module attributes {stable_mosaic.version = 11 : i64} {
  func.func @_cq_attention_kernel(%arg0: i32, %arg1: memref<1x16x32xf32, #tpu.memory_space<vmem>>, %arg2: memref<1x8x32xf32, #tpu.memory_space<vmem>>, %arg3: memref<1x16x1xf32, #tpu.memory_space<vmem>>, %arg4: memref<1x1x8xf32, #tpu.memory_space<vmem>>, %arg5: memref<32x1xf32, #tpu.memory_space<vmem>>, %arg6: memref<1x32xf32, #tpu.memory_space<vmem>>, %arg7: memref<1x32xf32, #tpu.memory_space<vmem>>, %arg8: memref<1x1xf32, #tpu.memory_space<vmem>>, %arg9: memref<1x16x128xf32, #tpu.memory_space<vmem>>) attributes {dimension_semantics = [#tpu.dimension_semantics<parallel>], iteration_bounds = array<i64: 2>, scalar_prefetch = 0 : i64, scratch_operands = 0 : i64, tpu.core_type = #tpu.core_type<tc>, window_params = [{transform_indices = @transform_0, window_bounds = array<i64: 1, 16, 32>}, {transform_indices = @transform_1, window_bounds = array<i64: 1, 8, 32>}, {transform_indices = @transform_2, window_bounds = array<i64: 1, 16, 1>}, {transform_indices = @transform_3, window_bounds = array<i64: 1, 1, 8>}, {pipeline_mode = #tpu.pipeline_mode<synchronous>, transform_indices = @transform_4, window_bounds = array<i64: 32, 1>}, {pipeline_mode = #tpu.pipeline_mode<synchronous>, transform_indices = @transform_5, window_bounds = array<i64: 1, 32>}, {pipeline_mode = #tpu.pipeline_mode<synchronous>, transform_indices = @transform_6, window_bounds = array<i64: 1, 32>}, {pipeline_mode = #tpu.pipeline_mode<synchronous>, transform_indices = @transform_7, window_bounds = array<i64: 1, 1>}, {transform_indices = @transform_8, window_bounds = array<i64: 1, 16, 128>}]} {
    %c0 = arith.constant 0 : index
    %c0_0 = arith.constant 0 : index
    %c0_1 = arith.constant 0 : index
    %0 = vector.load %arg1[%c0, %c0_0, %c0_1] : memref<1x16x32xf32, #tpu.memory_space<vmem>>, vector<1x16x32xf32>
    %1 = vector.shape_cast %0 : vector<1x16x32xf32> to vector<16x32xf32>
    %c0_2 = arith.constant 0 : index
    %c0_3 = arith.constant 0 : index
    %c0_4 = arith.constant 0 : index
    %2 = vector.load %arg2[%c0_2, %c0_3, %c0_4] : memref<1x8x32xf32, #tpu.memory_space<vmem>>, vector<1x8x32xf32>
    %3 = vector.shape_cast %2 : vector<1x8x32xf32> to vector<8x32xf32>
    %c0_5 = arith.constant 0 : index
    %c0_6 = arith.constant 0 : index
    %c0_7 = arith.constant 0 : index
    %4 = vector.load %arg3[%c0_5, %c0_6, %c0_7] : memref<1x16x1xf32, #tpu.memory_space<vmem>>, vector<1x16x1xf32>
    %5 = vector.shape_cast %4 : vector<1x16x1xf32> to vector<16x1xf32>
    %c0_8 = arith.constant 0 : index
    %c0_9 = arith.constant 0 : index
    %c0_10 = arith.constant 0 : index
    %6 = vector.load %arg4[%c0_8, %c0_9, %c0_10] : memref<1x1x8xf32, #tpu.memory_space<vmem>>, vector<1x1x8xf32>
    %7 = vector.shape_cast %6 : vector<1x1x8xf32> to vector<1x8xf32>
    %c0_11 = arith.constant 0 : index
    %c0_12 = arith.constant 0 : index
    %8 = vector.load %arg5[%c0_11, %c0_12] : memref<32x1xf32, #tpu.memory_space<vmem>>, vector<32x1xf32>
    %c0_13 = arith.constant 0 : index
    %c0_14 = arith.constant 0 : index
    %9 = vector.load %arg6[%c0_13, %c0_14] : memref<1x32xf32, #tpu.memory_space<vmem>>, vector<1x32xf32>
    %c0_15 = arith.constant 0 : index
    %c0_16 = arith.constant 0 : index
    %10 = vector.load %arg7[%c0_15, %c0_16] : memref<1x32xf32, #tpu.memory_space<vmem>>, vector<1x32xf32>
    %c0_17 = arith.constant 0 : index
    %c0_18 = arith.constant 0 : index
    %11 = vector.load %arg8[%c0_17, %c0_18] : memref<1x1xf32, #tpu.memory_space<vmem>>, vector<1x1xf32>
    %cst = arith.constant dense<0.000000e+00> : vector<16x1xf32>
    %12 = tpu.matmul %1, %8, %cst {dimension_numbers = #tpu.dot_dimension_numbers<[1], [0], [0], [1], [0, 0, 1, 1], [], []>} : vector<16x32xf32>, vector<32x1xf32>, vector<16x1xf32> -> vector<16x1xf32>
    %cst_19 = arith.constant dense<0.000000e+00> : vector<1x8xf32>
    %13 = tpu.matmul %9, %3, %cst_19 {dimension_numbers = #tpu.dot_dimension_numbers<[1], [1], [0], [0], [0, 0, 1, 0], [], []>} : vector<1x32xf32>, vector<8x32xf32>, vector<1x8xf32> -> vector<1x8xf32>
    %14 = vector.broadcast %10 : vector<1x32xf32> to vector<16x32xf32>
    %15 = arith.mulf %1, %14 : vector<16x32xf32>
    %cst_20 = arith.constant dense<0.000000e+00> : vector<16x8xf32>
    %16 = tpu.matmul %15, %3, %cst_20 {dimension_numbers = #tpu.dot_dimension_numbers<[1], [1], [0], [0], [0, 0, 1, 0], [], []>} : vector<16x32xf32>, vector<8x32xf32>, vector<16x8xf32> -> vector<16x8xf32>
    %17 = vector.broadcast %12 : vector<16x1xf32> to vector<16x8xf32>
    %18 = arith.addf %16, %17 : vector<16x8xf32>
    %19 = vector.broadcast %13 : vector<1x8xf32> to vector<16x8xf32>
    %20 = arith.addf %18, %19 : vector<16x8xf32>
    %21 = vector.broadcast %11 : vector<1x1xf32> to vector<16x8xf32>
    %22 = arith.addf %20, %21 : vector<16x8xf32>
    %cst_21 = arith.constant 1.000000e+00 : f32
    %23 = vector.broadcast %cst_21 : f32 to vector<1x8xf32>
    %24 = arith.subf %23, %7 : vector<1x8xf32>
    %cst_22 = arith.constant -1.000000e+30 : f32
    %25 = vector.broadcast %cst_22 : f32 to vector<1x8xf32>
    %26 = arith.mulf %25, %24 : vector<1x8xf32>
    %27 = vector.broadcast %26 : vector<1x8xf32> to vector<16x8xf32>
    %28 = arith.addf %22, %27 : vector<16x8xf32>
    %cst_23 = arith.constant 1.000000e+00 : f32
    %29 = vector.broadcast %cst_23 : f32 to vector<16x1xf32>
    %30 = arith.subf %29, %5 : vector<16x1xf32>
    %cst_24 = arith.constant -1.000000e+30 : f32
    %31 = vector.broadcast %cst_24 : f32 to vector<16x1xf32>
    %32 = arith.mulf %31, %30 : vector<16x1xf32>
    %33 = vector.broadcast %32 : vector<16x1xf32> to vector<16x8xf32>
    %34 = arith.addf %22, %33 : vector<16x8xf32>
    %cst_25 = arith.constant dense<0xFF800000> : vector<16xf32>
    %35 = vector.multi_reduction <maximumf>, %28, %cst_25 [1] : vector<16x8xf32> to vector<16xf32>
    %36 = vector.shape_cast %35 : vector<16xf32> to vector<16x1xf32>
    %37 = vector.broadcast %36 : vector<16x1xf32> to vector<16x8xf32>
    %38 = arith.subf %28, %37 : vector<16x8xf32>
    %39 = math.exp %38 : vector<16x8xf32>
    %cst_26 = arith.constant dense<0.000000e+00> : vector<16xf32>
    %40 = vector.multi_reduction <add>, %39, %cst_26 [1] : vector<16x8xf32> to vector<16xf32>
    %41 = vector.shape_cast %40 : vector<16xf32> to vector<16x1xf32>
    %42 = vector.broadcast %41 : vector<16x1xf32> to vector<16x8xf32>
    %43 = arith.divf %39, %42 : vector<16x8xf32>
    %cst_27 = arith.constant dense<0xFF800000> : vector<8xf32>
    %44 = vector.multi_reduction <maximumf>, %34, %cst_27 [0] : vector<16x8xf32> to vector<8xf32>
    %45 = vector.shape_cast %44 : vector<8xf32> to vector<1x8xf32>
    %46 = vector.broadcast %45 : vector<1x8xf32> to vector<16x8xf32>
    %47 = arith.subf %34, %46 : vector<16x8xf32>
    %48 = math.exp %47 : vector<16x8xf32>
    %cst_28 = arith.constant dense<0.000000e+00> : vector<8xf32>
    %49 = vector.multi_reduction <add>, %48, %cst_28 [0] : vector<16x8xf32> to vector<8xf32>
    %50 = vector.shape_cast %49 : vector<8xf32> to vector<1x8xf32>
    %51 = vector.broadcast %50 : vector<1x8xf32> to vector<16x8xf32>
    %52 = arith.divf %48, %51 : vector<16x8xf32>
    %cst_29 = arith.constant dense<0.000000e+00> : vector<16x32xf32>
    %53 = tpu.matmul %43, %3, %cst_29 {dimension_numbers = #tpu.dot_dimension_numbers<[1], [0], [0], [1], [0, 0, 1, 1], [], []>} : vector<16x8xf32>, vector<8x32xf32>, vector<16x32xf32> -> vector<16x32xf32>
    %cst_30 = arith.constant dense<0.000000e+00> : vector<16x16xf32>
    %54 = tpu.matmul %43, %52, %cst_30 {dimension_numbers = #tpu.dot_dimension_numbers<[1], [1], [0], [0], [0, 0, 1, 0], [], []>} : vector<16x8xf32>, vector<16x8xf32>, vector<16x16xf32> -> vector<16x16xf32>
    %cst_31 = arith.constant dense<0.000000e+00> : vector<16x32xf32>
    %55 = tpu.matmul %54, %1, %cst_31 {dimension_numbers = #tpu.dot_dimension_numbers<[1], [0], [0], [1], [0, 0, 1, 1], [], []>} : vector<16x16xf32>, vector<16x32xf32>, vector<16x32xf32> -> vector<16x32xf32>
    %56 = arith.mulf %1, %53 : vector<16x32xf32>
    %57 = arith.mulf %1, %55 : vector<16x32xf32>
    %58 = tpu.concatenate %1, %53, %56, %57 in 1 : vector<16x32xf32>, vector<16x32xf32>, vector<16x32xf32>, vector<16x32xf32> -> vector<16x128xf32>
    %c0_32 = arith.constant 0 : index
    %c0_33 = arith.constant 0 : index
    %c0_34 = arith.constant 0 : index
    %59 = vector.load %arg9[%c0_32, %c0_33, %c0_34] : memref<1x16x128xf32, #tpu.memory_space<vmem>>, vector<1x16x128xf32>
    %60 = vector.shape_cast %59 : vector<1x16x128xf32> to vector<16x128xf32>
    %61 = vector.shape_cast %58 : vector<16x128xf32> to vector<1x16x128xf32>
    tpu.vector_store %arg9[%c0_32, %c0_33, %c0_34], %61 {strides = array<i32>} : memref<1x16x128xf32, #tpu.memory_space<vmem>>, vector<1x16x128xf32>,
    return
  }
  func.func @transform_0(%arg0: i32) -> (i32, i32, i32) {
    %c0_i32 = arith.constant 0 : i32
    %c0_i32_0 = arith.constant 0 : i32
    %c0_i32_1 = arith.constant 0 : i32
    return %arg0, %c0_i32, %c0_i32_0 : i32, i32, i32
  }
  func.func @transform_1(%arg0: i32) -> (i32, i32, i32) {
    %c0_i32 = arith.constant 0 : i32
    %c0_i32_0 = arith.constant 0 : i32
    %c0_i32_1 = arith.constant 0 : i32
    return %arg0, %c0_i32, %c0_i32_0 : i32, i32, i32
  }
  func.func @transform_2(%arg0: i32) -> (i32, i32, i32) {
    %c0_i32 = arith.constant 0 : i32
    %c0_i32_0 = arith.constant 0 : i32
    %c0_i32_1 = arith.constant 0 : i32
    return %arg0, %c0_i32, %c0_i32_0 : i32, i32, i32
  }
  func.func @transform_3(%arg0: i32) -> (i32, i32, i32) {
    %c0_i32 = arith.constant 0 : i32
    %c0_i32_0 = arith.constant 0 : i32
    %c0_i32_1 = arith.constant 0 : i32
    return %arg0, %c0_i32, %c0_i32_0 : i32, i32, i32
  }
  func.func @transform_4(%arg0: i32) -> (i32, i32) {
    %c0_i32 = arith.constant 0 : i32
    %c0_i32_0 = arith.constant 0 : i32
    %c0_i32_1 = arith.constant 0 : i32
    return %c0_i32, %c0_i32_0 : i32, i32
  }
  func.func @transform_5(%arg0: i32) -> (i32, i32) {
    %c0_i32 = arith.constant 0 : i32
    %c0_i32_0 = arith.constant 0 : i32
    %c0_i32_1 = arith.constant 0 : i32
    return %c0_i32, %c0_i32_0 : i32, i32
  }
  func.func @transform_6(%arg0: i32) -> (i32, i32) {
    %c0_i32 = arith.constant 0 : i32
    %c0_i32_0 = arith.constant 0 : i32
    %c0_i32_1 = arith.constant 0 : i32
    return %c0_i32, %c0_i32_0 : i32, i32
  }
  func.func @transform_7(%arg0: i32) -> (i32, i32) {
    %c0_i32 = arith.constant 0 : i32
    %c0_i32_0 = arith.constant 0 : i32
    %c0_i32_1 = arith.constant 0 : i32
    return %c0_i32, %c0_i32_0 : i32, i32
  }
  func.func @transform_8(%arg0: i32) -> (i32, i32, i32) {
    %c0_i32 = arith.constant 0 : i32
    %c0_i32_0 = arith.constant 0 : i32
    %c0_i32_1 = arith.constant 0 : i32
    return %arg0, %c0_i32, %c0_i32_0 : i32, i32, i32
  }
}

</mosaic_0001>

<bundles_post_ra>
// kernel: tpu_custom_call.1
= control target key start
LH: loop header
LB: loop body
LE: loop exit
PB: predicated region body
PF: predicated region fallthrough
CT: control target
= control target key end

     0   :  { %s1206_s0 = inlined_call_operand.vmem [shape: f32[2,16,32], index: 0, kind: input, shape index: {}]   ;;  %s1207_s1 = inlined_call_operand.vmem [shape: f32[2,8,32], index: 1, kind: input, shape index: {}]   ;;  %s1208_s2 = inlined_call_operand.vmem [shape: f32[2,16,1], index: 2, kind: input, shape index: {}]   ;;  %s1209_s3 = inlined_call_operand.vmem [shape: f32[2,1,8], index: 3, kind: input, shape index: {}]   ;;  %s1210_s4 = inlined_call_operand.vmem [shape: f32[32,1], index: 4, kind: input, shape index: {}]   ;;  %s1211_s5 = inlined_call_operand.vmem [shape: f32[1,32], index: 5, kind: input, shape index: {}]   ;;  %s1212_s6 = inlined_call_operand.vmem [shape: f32[1,32], index: 6, kind: input, shape index: {}]   ;;  %s1213_s7 = inlined_call_operand.<no memory space> [shape: f32[1,1], index: 7, kind: input, shape index: {}]   ;;  %s1214_s8 = inlined_call_operand.hbm [shape: f32[2,16,128], index: 8, kind: output, shape index: {}]  }
   0x1   :  { %v13_v0 = vstv %s1213_s7 }
   0x2   :  { %14 = vst [vmem:[#allocation2] sm:$0x1] %v13_v0 }
   0x3   :  { %15 = vsyncpa [#allocation4], 0 }
   0x4   :  { %17 = vsyncpa [#allocation4 + $0x1], 0  ;;  %s1046_s29 = smov 0   ;;  %s1048_s30 = smov 0  }
   0x5   :  { %s1050_s9 = smov 0   ;;  %s1052_s10 = smov 0  }
   0x6 LB: > { %s1067_s7 = sadd.s32 4294967295, %s990_s10   ;;  %s830_s11 = sadd.s32 4294967294, %s990_s10   ;;  %s990_s10 = sphi %s1052_s10, %s1220_s10   ;;  %s986_s9 = sphi %s1050_s9, %s1219_s9   ;;  %s982_s30 = sphi %s1048_s30, %s1218_s30   ;;  %s978_s29 = sphi %s1046_s29, %s1217_s29  }
   0x7   : > { %s1071_s12 = sadd.s32 1, %s990_s10   ;;  %s218_s13 = sadd.s32 1, %s986_s9 }
   0x8   : > { %s215_s14 = ssub.s32 %s990_s10, %s1071_s12  ;;  %p228_p0 = scmp.ne.s32.totalorder %s986_s9, %s982_s30 }
   0x9   : > { %p216_p1 = scmp.eq.s32.totalorder %s215_s14, 0  ;;  %p229_p2 = scmp.eq.s32.totalorder %s1067_s7, 1 }
   0xa   : > { %p234_p3 = scmp.ne.s32.totalorder %s982_s30, %s978_s29  ;;  %p235_p4 = scmp.eq.s32.totalorder %s830_s11, 1 }
   0xb   : > { %s1082_s15 = scalar_select %p216_p1, %s986_s9, %s218_s13  }
   0xc   : > { %p1084_p5 = por %p229_p2, %p228_p0  ;;  %p1088_p6 = por %p235_p4, %p234_p3 }
   0xd   : > { %p833_p7 = scmp.ge.s32.totalorder %s990_s10, 1  ;;  %p294_p8 = scmp.lt.s32.totalorder %s990_s10, 3 }
   0xf   : > { %p295_p9 = pnand %p833_p7, %p294_p8 }
  0x10   : > { %p340_p10 = scmp.lt.s32.totalorder (!%p295_p9), %s1067_s7, 1  ;;  %s337_s20 = sand.u32 (!%p295_p9), 1, %s982_s30  }
  0x11   : > { %298 = sbr.rel (%p295_p9) target bundleno = 935 (0x3a7), region = 52  ;;  %s834_s21 = sshll.u32 (!%p295_p9), %s337_s20, 4 }
  0x12   : > { %s862_s23 = sshll.u32 (!%p295_p9), %s1067_s7, 4 }
  0x13   : > { %s731_s27 = scalar_lea.hbm (!%p295_p9), %s1214_s8, %s862_s23 }
  0x16   : > { %v366_v1 = vld [vmem:[%s1210_s4 + $0x18] sm:$0xff]  ;;  %v365_v2 = vld [vmem:[%s1210_s4 + $0x10] sm:$0xff]  ;;  %v992_v3 = vmov 0   ;;  %v364_v4 = vld [vmem:[%s1210_s4 + $0x8] sm:$0xff]  ;;  %s1105_s24 = scalar_select %p340_p10, %s1067_s7, 1  ;;  %vm370_vm0 = vcmask 261120  }
  0x17   : > { %389 = vmatpush.msra.mxu0 %v366_v1  ;;  %909 = vset.pattern.permute.xlu0 %v992_v3  ;;  %v912_v5 = vld [vmem:[%s1212_s6] ss:$0 sm:$0xff]  ;;  %vm504_vm1 = vcmask 64512   ;;  %vm651_vm14 = vcmask 130048   ;;  %vm711_vm15 = vcmask 523264   ;;  %s720_s7 = scalar_lea.sflag [#allocation4], %s337_s20 }
  0x18   : > { %910 = vset.pattern.permute.xlu1 %v992_v3  ;;  %911 = vset.pattern.permute.xlu2 %v992_v3  ;;  %v363_v6 = vld [vmem:[%s1210_s4] sm:$0xff]  ;;  %s860_s11 = sshll.u32 %s1105_s24, 4  ;;  %s837_s13 = sshll.u32 %s1105_s24, 3 }
  0x19   : > { %390 = vmatpush.msra.mxu0 %v365_v2  ;;  %s344_s19 = scalar_lea.vmem %s1206_s0, %s860_s11  ;;  %s348_s22 = scalar_lea.vmem %s1207_s1, %s837_s13  ;;  %v367_v10 = vld [vmem:[%s1211_s5] sm:$0x1] }
  0x1a   : > { %v1121_v7 = vld [vmem:[%s344_s19] sm:$0xff]  ;;  %v1131_v11 = vld [vmem:[%s344_s19 + $0x8] sm:$0xff]  ;;  %s353_s28 = scalar_lea.vmem %s1208_s2, %s860_s11  ;;  %s356_s18 = scalar_lea.vmem %s1209_s3, %s1105_s24 }
  0x1b   : > { %391 = vmatpush.msra.mxu0 %v364_v4  ;;  %v359_v8 = vld [vmem:[%s348_s22] sm:$0xff]  ;;  %v429_v9 = vmul.f32 %v912_v5, %v1121_v7  ;;  %v430_v12 = vmul.f32 %v912_v5, %v1131_v11  ;;  %v361_v15 = vld [vmem:[%s353_s28 + $0x8] sm:$0xff]  ;;  %s993_s24 = smov 32   ;;  %s994_s11 = smov 64  }
  0x1c   : > { %844 = vmatpush.xpose.msk.msra.mxu2 %vm370_vm0, %v359_v8  ;;  %842 = vmatpush.xpose.msk.msra.mxu1 %vm370_vm0, %v359_v8  ;;  %v360_v13 = vld [vmem:[%s353_s28] sm:$0xff]  ;;  %v489_v17 = vsub.f32 1.0, %v361_v15  ;;  %s995_s19 = smov 96   ;;  %s339_s22 = scalar_lea.vmem [#allocation3], %s834_s21 }
  0x1d   : > { %392 = vmatpush.msra.mxu0 %v363_v6  ;;  %863 = vmatpush.msra.mxu3 %v359_v8  ;;  %v488_v14 = vsub.f32 1.0, %v360_v13  ;;  %v913_v20 = vld [vmem:[#allocation2] ss:$0 sm:$0xff]  ;;  %s732_s28 = sshll.u32 %s339_s22, 4  ;;  %s734_s13 = sshll.u32 %s731_s27, 4  ;;  %s733_s28 = int_to_ptr.vmem [resolvable:$true] %s732_s28  ;;  %s735_s13 = int_to_ptr.hbm [resolvable:$true] %s734_s13 }
  0x1e   : > { %840 = vmatmul.msk.f32.vlgmr.msra.gmra.mxu0 %vm370_vm0, %v1121_v7  ;;  %v491_v18 = vmul.f32 -1e+30, %v489_v17  ;;  %v362_v23 = vld [vmem:[%s356_s18] sm:$0x1]  ;;  %s942_s14 = sshra.s32 %s735_s13, 4  ;;  %s943_s14 = int_to_ptr.hbm [resolvable:$true] %s942_s14 }
  0x1f   : > { %845 = vmatmul.msk.f32.vlgmr.msra.gmra.mxu2 %vm370_vm0, %v429_v9  ;;  %672 = vmatpush.msrb.mxu3 %v1131_v11  ;;  %v490_v16 = vmul.f32 -1e+30, %v488_v14  ;;  %v481_v24 = vsub.f32 1.0, %v362_v23  ;;  %s944_s18 = scalar_lea.hbm %s943_s14, 16  ;;  %p949_p0 = scmp.lt.s32.totalorder %s943_s14, %s1214_s8 }
  0x20   : > { %614 = vmatpush.msrb.mxu2 %v359_v8  ;;  %843 = vmatmul.msk.f32.vlgmr.msra.gmra.mxu1 %vm370_vm0, %v367_v10  ;;  %p945_p11 = scmp.ne.s32.totalorder %s943_s14, %s944_s18 }
  0x21   : > { %673 = vmatpush.msrb.mxu3 %v1121_v7  ;;  %494 = vperm.xlu2 %911, %v490_v16   ;;  %v482_v30 = vmul.f32 -1e+30, %v481_v24 }
  0x22   : > { %p946_p12 = pnand %p945_p11, %p1084_p5 }
  0x23   : > { %v484_v33 = vperm.slane %v482_v30, 0 }
  0x24   : > { %p947_p13 = pneg %p946_p12 }
  0x26   : > { %841 = vmatmul.msk.f32.gmra.mxu0 %vm370_vm0, %v1131_v11 }
  0x27   : > { %846 = vmatmul.msk.f32.gmra.mxu2 %vm370_vm0, %v430_v12 }
  0x29   : > { %499 = vperm.xlu2 %911, %v491_v18  }
  0x7b   : > { %v495_v27 = vpop.permute.xlu2 %494 }
  0x83   : > { %v500_v40 = vpop.permute.xlu2 %499 }
  0x9b   : > { %v394_v19 = vpop.f32.mrf.mxu0 }
  0x9c   : > { %433 = vperm.xlu0 %909, %v394_v19  }
  0x9d   : > { %v423_v25 = vpop.f32.mrf.mxu1 }
  0x9e   : > { %v470_v28 = vperm.slane %v423_v25, 0 }
  0xa2   : > { %v464_v22 = vpop.f32.mrf.mxu2 }
  0xa3   : > { %v397_v21 = vpop.f32.mrf.mxu0 }
  0xa4   : > { %476 = vperm.xlu0 %909, %v913_v20   ;;  %438 = vperm.xlu1 %910, %v397_v21  }
  0xaa   : > { %v467_v31 = vpop.f32.mrf.mxu2 }
 0x10e   : > { %v434_v26 = vpop.permute.xlu0 %433 }
 0x10f   : > { %v465_v29 = vadd.f32 %v464_v22, %v434_v26 }
 0x111   : > { %v471_v32 = vadd.f32 %v470_v28, %v465_v29 }
 0x116   : > { %v477_v34 = vpop.permute.xlu0 %476  ;;  %v439_v35 = vpop.permute.xlu1 %438 }
 0x117   : > { %v479_v36 = vadd.f32 %v477_v34, %v471_v32  ;;  %v468_v37 = vadd.f32 %v467_v31, %v439_v35 }
 0x119   : > { %v472_v38 = vadd.f32 %v470_v28, %v468_v37  ;;  %v486_v39 = vadd.f32 %v484_v33, %v479_v36  ;;  %v502_v41 = vadd.f32 %v495_v27, %v479_v36 }
 0x11b   : > { %v480_v42 = vadd.f32 %v477_v34, %v472_v38  ;;  %v505_v43 = vsel %vm504_vm1, %v486_v39, -inf  ;;  %v553_v46 = vsel %vm504_vm1, %v502_v41, -inf }
 0x11c   : > { %506 = vmax.xlane.f32.xlu1 %v505_v43 }
 0x11d   : > { %v503_v44 = vadd.f32 %v500_v40, %v480_v42  ;;  %v487_v45 = vadd.f32 %v484_v33, %v480_v42 }
 0x11f   : > { %v554_v47 = vsel %vm504_vm1, %v503_v44, -inf  ;;  %v508_v48 = vsel %vm504_vm1, %v487_v45, -inf }
 0x120   : > { %v555_v49 = vmax.f32 %v553_v46, %v554_v47  ;;  %509 = vmax.xlane.f32.xlu0 %v508_v48 }
 0x122   : > { %v556_v50 = vrot.slane %v555_v49, 4 }
 0x124   : > { %v557_v51 = vmax.f32 %v555_v49, %v556_v50 }
 0x126   : > { %v558_v52 = vrot.slane %v557_v51, 2 }
 0x128   : > { %v559_v53 = vmax.f32 %v557_v51, %v558_v52 }
 0x12a   : > { %v560_v54 = vrot.slane %v559_v53, 1 }
 0x12c   : > { %v561_v55 = vmax.f32 %v559_v53, %v560_v54 }
 0x12e   : > { %v562_v56 = vsub.f32 %v502_v41, %v561_v55  ;;  %v563_v57 = vsub.f32 %v503_v44, %v561_v55 }
 0x130   : > { %v564_v58 = vmul.f32 1.442695, %v562_v56  ;;  %v566_v59 = vmul.f32 1.442695, %v563_v57 }
 0x132   : > { %914 = vpow2.f32 %v564_v58 }
 0x133   : > { %916 = vpow2.f32 %v566_v59 }
 0x138   : > { %v915_v60 = vpop.eup %914 }
 0x139   : > { %v917_v61 = vpop.eup %916  ;;  %v568_v62 = vsel %vm504_vm1, %v915_v60, 0.0 }
 0x13a   : > { %v569_v63 = vsel %vm504_vm1, %v917_v61, 0.0 }
 0x13b   : > { %v570_v0 = vadd.f32 %v569_v63, %v568_v62 }
 0x13d   : > { %v571_v1 = vrot.slane %v570_v0, 4 }
 0x13f   : > { %v572_v2 = vadd.f32 %v571_v1, %v570_v0 }
 0x141   : > { %v573_v3 = vrot.slane %v572_v2, 2 }
 0x143   : > { %v574_v4 = vadd.f32 %v573_v3, %v572_v2 }
 0x145   : > { %v575_v5 = vrot.slane %v574_v4, 1 }
 0x147   : > { %v576_v6 = vadd.f32 %v575_v5, %v574_v4 }
 0x149   : > { %918 = vrcp.f32 %v576_v6  ;;  %v588_v12 = vand.u32 2147483648, %v576_v6  ;;  %v586_v14 = vand.u32 2147483647, %v576_v6  ;;  %vm582_vm3 = vweird.f32 %v576_v6 }
 0x14b   : > { %v589_v16 = vor.u32 1.1754944e-38, %v588_v12  ;;  %vm587_vm5 = vcmp.eq.f32.partialorder %v586_v14, 8.507059e+37 }
 0x14f   : > { %v919_v8 = vpop.eup %918 }
 0x150   : > { %v578_v9 = vmul.f32 %v919_v8, %v576_v6  ;;  %vm583_vm2 = vweird.f32 %v919_v8 }
 0x151   : > { %vm584_vm4 = vmor %vm582_vm3, %vm583_vm2 }
 0x152   : > { %v579_v10 = vsub.f32 1.0, %v578_v9 }
 0x154   : > { %v580_v13 = vmul.f32 %v919_v8, %v579_v10 }
 0x156   : > { %v581_v15 = vadd.f32 %v919_v8, %v580_v13 }
 0x158   : > { %v585_v17 = vsel %vm584_vm4, %v919_v8, %v581_v15 }
 0x159   : > { %v590_v18 = vsel %vm587_vm5, %v589_v16, %v585_v17 }
 0x15a   : > { %v592_v19 = vmul.f32 %v917_v61, %v590_v18  ;;  %v591_v20 = vmul.f32 %v915_v60, %v590_v18 }
 0x15c   : > { %849 = vmatpush.xpose.msk.msrb.mxu1 %vm504_vm1, %v592_v19 }
 0x160   : > { %850 = vmatpush.xpose.msk.msrb.mxu1 %vm504_vm1, %v591_v20 }
 0x18f   : > { %v507_v21 = vpop.xlane.xlu1 %506 }
 0x190   : > { %v511_v22 = vsub.f32 %v486_v39, %v507_v21 }
 0x192   : > { %v513_v23 = vmul.f32 1.442695, %v511_v22 }
 0x193   : > { %v510_v24 = vpop.xlane.xlu0 %509 }
 0x194   : > { %920 = vpow2.f32 %v513_v23  ;;  %v512_v25 = vsub.f32 %v487_v45, %v510_v24 }
 0x196   : > { %v515_v26 = vmul.f32 1.442695, %v512_v25 }
 0x198   : > { %922 = vpow2.f32 %v515_v26 }
 0x19a   : > { %v921_v27 = vpop.eup %920 }
 0x19b   : > { %v517_v28 = vsel %vm504_vm1, %v921_v27, 0.0 }
 0x19c   : > { %518 = vadd.xlane.f32.xlu2 %v517_v28 }
 0x19e   : > { %v923_v29 = vpop.eup %922 }
 0x19f   : > { %v520_v30 = vsel %vm504_vm1, %v923_v29, 0.0 }
 0x1a0   : > { %521 = vadd.xlane.f32.xlu1 %v520_v30 }
 0x20f   : > { %v519_v31 = vpop.xlane.xlu2 %518 }
 0x210   : > { %924 = vrcp.f32 %v519_v31  ;;  %v532_v37 = vand.u32 2147483647, %v519_v31  ;;  %v534_v38 = vand.u32 2147483648, %v519_v31  ;;  %vm528_vm7 = vweird.f32 %v519_v31 }
 0x212   : > { %vm533_vm9 = vcmp.eq.f32.partialorder %v532_v37, 8.507059e+37  ;;  %v535_v43 = vor.u32 1.1754944e-38, %v534_v38 }
 0x213   : > { %v522_v32 = vpop.xlane.xlu1 %521 }
 0x214   : > { %926 = vrcp.f32 %v522_v32  ;;  %v549_v44 = vand.u32 2147483648, %v522_v32  ;;  %v547_v47 = vand.u32 2147483647, %v522_v32  ;;  %vm543_vm11 = vweird.f32 %v522_v32 }
 0x216   : > { %v925_v33 = vpop.eup %924  ;;  %v550_v51 = vor.u32 1.1754944e-38, %v549_v44  ;;  %vm548_vm13 = vcmp.eq.f32.partialorder %v547_v47, 8.507059e+37 }
 0x217   : > { %v524_v34 = vmul.f32 %v925_v33, %v519_v31  ;;  %vm529_vm6 = vweird.f32 %v925_v33 }
 0x218   : > { %vm530_vm8 = vmor %vm528_vm7, %vm529_vm6 }
 0x219   : > { %v525_v35 = vsub.f32 1.0, %v524_v34 }
 0x21a   : > { %v927_v36 = vpop.eup %926 }
 0x21b   : > { %v526_v39 = vmul.f32 %v925_v33, %v525_v35  ;;  %v539_v40 = vmul.f32 %v927_v36, %v522_v32  ;;  %vm544_vm10 = vweird.f32 %v927_v36 }
 0x21c   : > { %vm545_vm12 = vmor %vm543_vm11, %vm544_vm10 }
 0x21d   : > { %v527_v41 = vadd.f32 %v925_v33, %v526_v39  ;;  %v540_v42 = vsub.f32 1.0, %v539_v40 }
 0x21f   : > { %v541_v45 = vmul.f32 %v927_v36, %v540_v42  ;;  %v531_v46 = vsel %vm530_vm8, %v925_v33, %v527_v41 }
 0x220   : > { %v536_v48 = vsel %vm533_vm9, %v535_v43, %v531_v46 }
 0x221   : > { %v537_v49 = vmul.f32 %v921_v27, %v536_v48  ;;  %v542_v50 = vadd.f32 %v927_v36, %v541_v45 }
 0x223   : > { %847 = vmatmul.msk.f32.vlgmr.msrb.gmra.mxu2 %vm504_vm1, %v537_v49  ;;  %851 = vmatmul.msk.f32.vlgmr.msrb.gmra.mxu1 %vm504_vm1, %v537_v49  ;;  %v546_v52 = vsel %vm545_vm12, %v927_v36, %v542_v50 }
 0x224   : > { %v551_v53 = vsel %vm548_vm13, %v550_v51, %v546_v52 }
 0x225   : > { %v552_v54 = vmul.f32 %v923_v29, %v551_v53 }
 0x227   : > { %848 = vmatmul.msk.f32.vlgmr.msra.gmra.mxu3 %vm504_vm1, %v552_v54 }
 0x22b   : > { %852 = vmatmul.msk.f32.gmra.mxu1 %vm504_vm1, %v552_v54  ;;  %vm714_vm1 = vcmask 785408  }
 0x2a0   : > { %v645_v55 = vpop.f32.mrf.mxu1 }
 0x2a1   : > { %853 = vmatmul.msk.f32.vlgmr.msrb.gmra.mxu3 %vm651_vm14, %v645_v55 }
 0x2a6   : > { %v616_v56 = vpop.f32.mrf.mxu2 }
 0x2a7   : > { %v681_v57 = vmul.f32 %v616_v56, %v1121_v7  ;;  %687 = vrot.lane.b32.xlu2 %v616_v56, %s993_s24 }
 0x2a8   : > { %v648_v58 = vpop.f32.mrf.mxu1 }
 0x2a9   : > { %695 = vrot.lane.b32.xlu1 %v681_v57, %s994_s11  ;;  %854 = vmatmul.msk.f32.gmra.mxu3 %vm651_vm14, %v648_v58 }
 0x2aa   : > { %v619_v59 = vpop.f32.mrf.mxu3 }
 0x2ab   : > { %689 = vrot.lane.b32.xlu0 %v619_v59, %s993_s24  ;;  %v682_v60 = vmul.f32 %v619_v59, %v1131_v11 }
 0x2b3   : > { %697 = vrot.lane.b32.xlu0 %v682_v60, %s994_s11 }
 0x301   : > { %v688_v1 = vpop.permute.xlu2 %687 }
 0x302   : > { %v709_v3 = vsel %vm370_vm0, %v1121_v7, %v688_v1 }
 0x31b   : > { %v696_v2 = vpop.permute.xlu1 %695 }
 0x31c   : > { %v712_v4 = vsel %vm711_vm15, %v709_v3, %v696_v2 }
 0x31d   : > { %v690_v8 = vpop.permute.xlu0 %689 }
 0x324   : > { %v675_v61 = vpop.f32.mrf.mxu3 }
 0x325   : > { %v683_v62 = vmul.f32 %v675_v61, %v1121_v7  ;;  %v698_v9 = vpop.permute.xlu0 %697  ;;  %v710_v7 = vsel %vm370_vm0, %v1131_v11, %v690_v8 }
 0x326   : > { %v713_v10 = vsel %vm711_vm15, %v710_v7, %v698_v9 }
 0x327   : > { %703 = vrot.lane.b32.xlu2 %v683_v62, %s995_s19 }
 0x32c   : > { %v678_v63 = vpop.f32.mrf.mxu3 }
 0x32d   : > { %v684_v0 = vmul.f32 %v678_v63, %v1131_v11 }
 0x32f   : > { %705 = vrot.lane.b32.xlu1 %v684_v0, %s995_s19  ;;  %s948_s19 = scalar_lea.hbm %s1214_s8, 32 }
 0x330   : > { %p950_p1 = scmp.lt.s32.totalorder %s948_s19, %s944_s18 }
 0x332   : > { %p951_p2 = por %p950_p1, %p949_p0 }
 0x334   : > { %p952_p3 = pnand %p951_p2, %p947_p13 }
 0x381   : > { %v704_v5 = vpop.permute.xlu2 %703 }
 0x382   : > { %v715_v6 = vsel %vm714_vm1, %v712_v4, %v704_v5 }
 0x383   : > { %717 = vst [vmem:[%s339_s22] sm:$0xff] %v715_v6 }
 0x3a1   : > { %v706_v12 = vpop.permute.xlu1 %705 }
 0x3a2   : > { %v716_v13 = vsel %vm714_vm1, %v713_v10, %v706_v12 }
 0x3a3   : > { %718 = vst [vmem:[%s339_s22 + $0x8] sm:$0xff] %v716_v13 }
 0x3a4   : > { %955 = shalt.err (!%p952_p3)
}
 0x3a5   : > { %s996_s20 = smov 128   ;;  %s997_s22 = smov 8  }
 0x3a6   : > { %864 = dma.vmem_to_hbm [thread:$0]  (%p1084_p5), %s733_s28, 256, %s735_s13, %s720_s7, %s996_s20, %s996_s20, %s997_s22  }
 0x3a7 PF: > { %p870_p4 = scmp.ge.s32.totalorder %s990_s10, 2  ;;  %s749_s25 = sand.u32 1, %s978_s29  }
 0x3a8   : > { %s750_s26 = scalar_lea.sflag [#allocation4], %s749_s25 }
 0x3a9   : > { %p867_p7 = pnand %p870_p4, %p1088_p6 }
 0x3ab   : > { %p868_p8 = pneg %p867_p7 }
 0x3ad   : > { %973 = dma.done.wait (%p868_p8), %s750_s26, 256  }
 0x3ae   : > { %975 = vsyncadd (%p868_p8), %s750_s26, 4294967040  ;;  %p20_p9 = scmp.ge.s32.totalorder %s1071_s12, 4   ;;  %s1217_s29 = smov %s982_s30 }
 0x3af   : > { %s1218_s30 = smov %s986_s9  ;;  %s1219_s9 = smov %s1082_s15 }
 0x3b0   : > { %s1220_s10 = smov %s1071_s12  ;;  %22 = sbr.rel (!%p20_p9) target bundleno = 6 (0x6), region = 96 }
 0x3b5   :  { %756 = vsyncpa [#allocation4], 1 }
 0x3b6   :  { %758 = vsyncpa [#allocation4 + $0x1], 1 }

</bundles_post_ra>
